<compile_context>
chip_gen: v7x
topology: tpu7x:2x2x1
jax: 0.10.0
libtpu: 0.0.40
codegen_flags: <defaults>
</compile_context>

<pallas_src>
import functools

import jax
import jax.numpy as jnp
from jax.experimental import pallas as pl
from jax.experimental.pallas import tpu as pltpu


# ----------------------------------------------------------------------------
# Fused STSGCN forward kernel (one batch element per grid step)
# ----------------------------------------------------------------------------
def _stsgcn_fused_kernel(x_ref, w_in_ref, b_in_ref, *refs,
                         n_layer, gcn_num, n_vertex):
    # refs = [K_0, emb_0, gw_0, gb_0, ..., K_{L-1}, emb_{L-1}, gw_{L-1}, gb_{L-1},
    #         w_out_t, b_out, o_ref]
    layer_refs = refs[:4 * n_layer]
    w_out_ref, b_out_ref, o_ref = refs[4 * n_layer:]
    V = n_vertex

    # ---- input layer: channel linear  Cin -> C  (lane axis = T*V, unchanged)
    x = x_ref[0]                                                  # (Cin, T*V)
    h = jnp.dot(w_in_ref[...], x,
                preferred_element_type=jnp.float32) + b_in_ref[...]

    # ---- STSGC layers: fully VMEM-resident -------------------------------
    for i in range(n_layer):
        k_ref, emb_ref, gw_ref, gb_ref = layer_refs[4 * i: 4 * i + 4]
        # temporal + spatial embeddings pre-folded into one flat addend
        h = h + emb_ref[...]                                      # (C, T*V)
        # time-shift concat + A@x_cat + middle-V crop == one lane-dense matmul
        agg = jnp.dot(h, k_ref[...],
                      preferred_element_type=jnp.float32)         # (C, (T-2)*V)
        out = None
        for g in range(gcn_num):                                  # G small, static
            z = jnp.dot(gw_ref[g], agg,
                        preferred_element_type=jnp.float32) + gb_ref[g]
            z = jnp.maximum(z, 0.0)                               # ReLU
            out = z if out is None else jnp.maximum(out, z)       # max over branches
        h = out                                                   # (C, (T-2)*V)

    # ---- output layer: per-vertex linear over flattened (channel*time) ----
    n_pred = o_ref.shape[1]
    t_final = w_out_ref.shape[0]
    y = jnp.zeros((n_pred, V), jnp.float32)
    for t in range(t_final):                                      # static, small
        y = y + jnp.dot(w_out_ref[t], h[:, t * V:(t + 1) * V],
                        preferred_element_type=jnp.float32)
    y = y + b_out_ref[...]
    o_ref[0] = y.astype(o_ref.dtype)


# ----------------------------------------------------------------------------
# Host-side (parameter-only) prep
# ----------------------------------------------------------------------------
def _build_agg_matrix(adj, t_in, n_vertex):
    """Block-banded matrix K (t_in*V, (t_in-2)*V) such that

        (x_flat @ K)[c, t'*V + v] = sum_w x_cat[c, t', w] * adj[V+v, w]

    i.e. it fuses the 3-way time-shift concat, the vertex aggregation and the
    crop to the middle V vertices (only rows V:2V of adj are ever used).
    """
    V = n_vertex
    a0 = adj[V:2 * V, 0:V].T           # weights for x_t
    a1 = adj[V:2 * V, V:2 * V].T       # weights for x_{t+1}
    a2 = adj[V:2 * V, 2 * V:3 * V].T   # weights for x_{t+2}
    t_out = t_in - 2
    K = jnp.zeros((t_in * V, t_out * V), dtype=adj.dtype)
    for tp in range(t_out):
        K = K.at[tp * V:(tp + 1) * V, tp * V:(tp + 1) * V].set(a0)
        K = K.at[(tp + 1) * V:(tp + 2) * V, tp * V:(tp + 1) * V].set(a1)
        K = K.at[(tp + 2) * V:(tp + 3) * V, tp * V:(tp + 1) * V].set(a2)
    return K


def stsgcn_forward(x_in, params, adj, *, in_channel, n_layer, gcn_num):
    """x_in: [B, in_channel+2, T, V]; the trailing 2 'te' channels are unused."""
    B, _, T, V = x_in.shape
    C = params["w_in"].shape[0]
    n_pred = params["w_out"].shape[0]
    t_final = T - 2 * n_layer

    x = x_in[:, :in_channel, :, :].reshape(B, in_channel, T * V)

    kernel_inputs = [x, params["w_in"], params["b_in"]]
    in_specs = [
        pl.BlockSpec((1, in_channel, T * V), lambda b: (b, 0, 0)),
        pl.BlockSpec(params["w_in"].shape, lambda b: (0, 0)),
        pl.BlockSpec(params["b_in"].shape, lambda b: (0, 0)),
    ]
    for i in range(n_layer):
        lp = params["layers"][i]
        t_in = T - 2 * i
        K = _build_agg_matrix(adj, t_in, V)
        emb = (lp["temporal_emb"] + lp["spatial_emb"]).reshape(C, t_in * V)
        kernel_inputs += [K, emb, lp["gcn_w"], lp["gcn_b"]]
        in_specs += [
            pl.BlockSpec(K.shape, lambda b: (0, 0)),
            pl.BlockSpec(emb.shape, lambda b: (0, 0)),
            pl.BlockSpec(lp["gcn_w"].shape, lambda b: (0, 0, 0)),
            pl.BlockSpec(lp["gcn_b"].shape, lambda b: (0, 0, 0)),
        ]

    # w_out[p, c*Tf + t]  ->  w_out_t[t, p, c]  (per-t channel-mixing matrices)
    w_out_t = params["w_out"].reshape(n_pred, C, t_final).transpose(2, 0, 1)
    kernel_inputs += [w_out_t, params["b_out"]]
    in_specs += [
        pl.BlockSpec(w_out_t.shape, lambda b: (0, 0, 0)),
        pl.BlockSpec(params["b_out"].shape, lambda b: (0, 0)),
    ]

    kernel = functools.partial(_stsgcn_fused_kernel, n_layer=n_layer,
                               gcn_num=gcn_num, n_vertex=V)
    return pl.pallas_call(
        kernel,
        out_shape=jax.ShapeDtypeStruct((B, n_pred, V), x.dtype),
        grid=(B,),
        in_specs=in_specs,
        out_specs=pl.BlockSpec((1, n_pred, V), lambda b: (b, 0, 0)),
        compiler_params=pltpu.CompilerParams(
            dimension_semantics=("parallel",)),
    )(*kernel_inputs)


# ----------------------------------------------------------------------------
# Pure-JAX reference (mirrors the original module formulation, un-fused)
# ----------------------------------------------------------------------------
def stsgcn_reference(x_in, params, adj, *, in_channel, n_layer):
    x = x_in[:, :in_channel, :, :]
    C = params["w_in"].shape[0]
    x = jnp.einsum('oc,bctv->botv', params["w_in"], x) \
        + params["b_in"].reshape(1, C, 1, 1)
    for i in range(n_layer):
        lp = params["layers"][i]
        x = x + lp["temporal_emb"] + lp["spatial_emb"]
        x_cat = jnp.concatenate(
            [x[:, :, :-2, :], x[:, :, 1:-1, :], x[:, :, 2:, :]], axis=-1)
        agg = jnp.einsum('bctw,vw->bctv', x_cat, adj)
        z = jnp.einsum('goc,bctv->gbotv', lp["gcn_w"], agg) \
            + lp["gcn_b"][:, None, :, None, :]
        z = jnp.maximum(z, 0.0)
        x = jnp.max(z, axis=0)
        V = x.shape[-1] // 3
        x = x[..., V:2 * V]
    B, C, Tf, V = x.shape
    y = jnp.einsum('pk,bkv->bpv', params["w_out"], x.reshape(B, C * Tf, V)) \
        + params["b_out"][None]
    return y


# ----------------------------------------------------------------------------
# Deterministic parameter construction
# ----------------------------------------------------------------------------
def make_params(key, *, in_channel, n_channel, n_his, n_vertex, n_layer,
                gcn_num, n_pred):
    ks = list(jax.random.split(key, 4 + 4 * n_layer))
    kit = iter(ks)

    params = {
        "w_in": jax.random.normal(next(kit), (n_channel, in_channel),
                                  jnp.float32) * 0.1,
        "b_in": jnp.zeros((n_channel, 1), jnp.float32),
        "layers": [],
    }
    for i in range(n_layer):
        t_in = n_his - 2 * i
        params["layers"].append({
            "temporal_emb": jax.random.uniform(next(kit),
                                               (1, n_channel, t_in, 1),
                                               jnp.float32),
            "spatial_emb": jax.random.uniform(next(kit),
                                              (1, n_channel, 1, n_vertex),
                                              jnp.float32),
            "gcn_w": jax.random.normal(next(kit),
                                       (gcn_num, n_channel, n_channel),
                                       jnp.float32) * 0.1,
            "gcn_b": jax.random.normal(next(kit), (gcn_num, n_channel, 1),
                                       jnp.float32) * 0.01,
        })
    t_final = n_his - 2 * n_layer
    params["w_out"] = jax.random.normal(next(kit),
                                        (n_pred, n_channel * t_final),
                                        jnp.float32) * 0.1
    params["b_out"] = jnp.zeros((n_pred, 1), jnp.float32)
    return params


def make_adj(key, n_vertex):
    """Mimics: adj -> repeat 3x3 -> mask * adj -> remove() block zeroing."""
    k1, k2 = jax.random.split(key)
    adj_base = (jax.random.uniform(k1, (n_vertex, n_vertex)) > 0.5).astype(jnp.float32)
    adj3 = jnp.tile(adj_base, (3, 3))
    mask = jax.random.uniform(k2, (3 * n_vertex, 3 * n_vertex), jnp.float32)
    adj = mask * adj3
    ri = jnp.arange(3 * n_vertex)[:, None]
    ci = jnp.arange(3 * n_vertex)[None, :]
    rm = ((ri < n_vertex) & (ci >= 2 * n_vertex)) | \
         ((ri >= 2 * n_vertex) & (ci < n_vertex))
    return jnp.where(rm, 0.0, adj)


if __name__ == "__main__":
    B = 2
    in_channel = 2
    n_channel = 16
    n_his = 8
    n_vertex = 8
    n_layer = 2
    gcn_num = 2
    n_pred = 4

    key = jax.random.PRNGKey(0)
    k_x, k_adj, k_par = jax.random.split(key, 3)

    # x_in carries the data channels plus 2 trailing "te" channels (unused)
    x_in = jax.random.normal(k_x, (B, in_channel + 2, n_his, n_vertex),
                             jnp.float32)
    adj = make_adj(k_adj, n_vertex)
    params = make_params(k_par, in_channel=in_channel, n_channel=n_channel,
                         n_his=n_his, n_vertex=n_vertex, n_layer=n_layer,
                         gcn_num=gcn_num, n_pred=n_pred)

    fwd = jax.jit(functools.partial(stsgcn_forward, in_channel=in_channel,
                                    n_layer=n_layer, gcn_num=gcn_num))
    out = fwd(x_in, params, adj)
    jax.block_until_ready(out)

    expected = (B, n_pred, n_vertex)
    assert out.shape == expected, (out.shape, expected)
    assert jnp.all(jnp.isfinite(out))

    # cross-check against the pure-JAX (original-ordering) reference
    ref = stsgcn_reference(x_in, params, adj, in_channel=in_channel,
                           n_layer=n_layer)
    rel_err = jnp.max(jnp.abs(out - ref)) / (jnp.max(jnp.abs(ref)) + 1e-6)
    assert rel_err < 2e-2, float(rel_err)

    print("KERNEL_OK")
</pallas_src>

<mosaic_0001>
module attributes {stable_mosaic.version = 11 : i64} {
  func.func @_stsgcn_fused_kernel(%arg0: i32, %arg1: memref<1x2x64xf32, #tpu.memory_space<vmem>>, %arg2: memref<16x2xf32, #tpu.memory_space<vmem>>, %arg3: memref<16x1xf32, #tpu.memory_space<vmem>>, %arg4: memref<64x48xf32, #tpu.memory_space<vmem>>, %arg5: memref<16x64xf32, #tpu.memory_space<vmem>>, %arg6: memref<2x16x16xf32, #tpu.memory_space<vmem>>, %arg7: memref<2x16x1xf32, #tpu.memory_space<vmem>>, %arg8: memref<48x32xf32, #tpu.memory_space<vmem>>, %arg9: memref<16x48xf32, #tpu.memory_space<vmem>>, %arg10: memref<2x16x16xf32, #tpu.memory_space<vmem>>, %arg11: memref<2x16x1xf32, #tpu.memory_space<vmem>>, %arg12: memref<4x4x16xf32, #tpu.memory_space<vmem>>, %arg13: memref<4x1xf32, #tpu.memory_space<vmem>>, %arg14: memref<1x4x8xf32, #tpu.memory_space<vmem>>) attributes {dimension_semantics = [#tpu.dimension_semantics<parallel>], iteration_bounds = array<i64: 2>, scalar_prefetch = 0 : i64, scratch_operands = 0 : i64, tpu.core_type = #tpu.core_type<tc>, window_params = [{transform_indices = @transform_0, window_bounds = array<i64: 1, 2, 64>}, {pipeline_mode = #tpu.pipeline_mode<synchronous>, transform_indices = @transform_1, window_bounds = array<i64: 16, 2>}, {pipeline_mode = #tpu.pipeline_mode<synchronous>, transform_indices = @transform_2, window_bounds = array<i64: 16, 1>}, {pipeline_mode = #tpu.pipeline_mode<synchronous>, transform_indices = @transform_3, window_bounds = array<i64: 64, 48>}, {pipeline_mode = #tpu.pipeline_mode<synchronous>, transform_indices = @transform_4, window_bounds = array<i64: 16, 64>}, {pipeline_mode = #tpu.pipeline_mode<synchronous>, transform_indices = @transform_5, window_bounds = array<i64: 2, 16, 16>}, {pipeline_mode = #tpu.pipeline_mode<synchronous>, transform_indices = @transform_6, window_bounds = array<i64: 2, 16, 1>}, {pipeline_mode = #tpu.pipeline_mode<synchronous>, transform_indices = @transform_7, window_bounds = array<i64: 48, 32>}, {pipeline_mode = #tpu.pipeline_mode<synchronous>, transform_indices = @transform_8, window_bounds = array<i64: 16, 48>}, {pipeline_mode = #tpu.pipeline_mode<synchronous>, transform_indices = @transform_9, window_bounds = array<i64: 2, 16, 16>}, {pipeline_mode = #tpu.pipeline_mode<synchronous>, transform_indices = @transform_10, window_bounds = array<i64: 2, 16, 1>}, {pipeline_mode = #tpu.pipeline_mode<synchronous>, transform_indices = @transform_11, window_bounds = array<i64: 4, 4, 16>}, {pipeline_mode = #tpu.pipeline_mode<synchronous>, transform_indices = @transform_12, window_bounds = array<i64: 4, 1>}, {transform_indices = @transform_13, window_bounds = array<i64: 1, 4, 8>}]} {
    %c0 = arith.constant 0 : index
    %c0_0 = arith.constant 0 : index
    %c0_1 = arith.constant 0 : index
    %0 = vector.load %arg1[%c0, %c0_0, %c0_1] : memref<1x2x64xf32, #tpu.memory_space<vmem>>, vector<1x2x64xf32>
    %1 = vector.shape_cast %0 : vector<1x2x64xf32> to vector<2x64xf32>
    %c0_2 = arith.constant 0 : index
    %c0_3 = arith.constant 0 : index
    %2 = vector.load %arg2[%c0_2, %c0_3] : memref<16x2xf32, #tpu.memory_space<vmem>>, vector<16x2xf32>
    %cst = arith.constant dense<0.000000e+00> : vector<16x64xf32>
    %3 = tpu.matmul %2, %1, %cst {dimension_numbers = #tpu.dot_dimension_numbers<[1], [0], [0], [1], [0, 0, 1, 1], [], []>} : vector<16x2xf32>, vector<2x64xf32>, vector<16x64xf32> -> vector<16x64xf32>
    %c0_4 = arith.constant 0 : index
    %c0_5 = arith.constant 0 : index
    %4 = vector.load %arg3[%c0_4, %c0_5] : memref<16x1xf32, #tpu.memory_space<vmem>>, vector<16x1xf32>
    %5 = vector.broadcast %4 : vector<16x1xf32> to vector<16x64xf32>
    %6 = arith.addf %3, %5 : vector<16x64xf32>
    %c0_6 = arith.constant 0 : index
    %c0_7 = arith.constant 0 : index
    %7 = vector.load %arg5[%c0_6, %c0_7] : memref<16x64xf32, #tpu.memory_space<vmem>>, vector<16x64xf32>
    %8 = arith.addf %6, %7 : vector<16x64xf32>
    %c0_8 = arith.constant 0 : index
    %c0_9 = arith.constant 0 : index
    %9 = vector.load %arg4[%c0_8, %c0_9] : memref<64x48xf32, #tpu.memory_space<vmem>>, vector<64x48xf32>
    %cst_10 = arith.constant dense<0.000000e+00> : vector<16x48xf32>
    %10 = tpu.matmul %8, %9, %cst_10 {dimension_numbers = #tpu.dot_dimension_numbers<[1], [0], [0], [1], [0, 0, 1, 1], [], []>} : vector<16x64xf32>, vector<64x48xf32>, vector<16x48xf32> -> vector<16x48xf32>
    %c0_11 = arith.constant 0 : index
    %c0_12 = arith.constant 0 : index
    %c0_13 = arith.constant 0 : index
    %11 = vector.load %arg6[%c0_11, %c0_12, %c0_13] : memref<2x16x16xf32, #tpu.memory_space<vmem>>, vector<1x16x16xf32>
    %12 = vector.shape_cast %11 : vector<1x16x16xf32> to vector<16x16xf32>
    %cst_14 = arith.constant dense<0.000000e+00> : vector<16x48xf32>
    %13 = tpu.matmul %12, %10, %cst_14 {dimension_numbers = #tpu.dot_dimension_numbers<[1], [0], [0], [1], [0, 0, 1, 1], [], []>} : vector<16x16xf32>, vector<16x48xf32>, vector<16x48xf32> -> vector<16x48xf32>
    %c0_15 = arith.constant 0 : index
    %c0_16 = arith.constant 0 : index
    %c0_17 = arith.constant 0 : index
    %14 = vector.load %arg7[%c0_15, %c0_16, %c0_17] : memref<2x16x1xf32, #tpu.memory_space<vmem>>, vector<1x16x1xf32>
    %15 = vector.shape_cast %14 : vector<1x16x1xf32> to vector<16x1xf32>
    %16 = vector.broadcast %15 : vector<16x1xf32> to vector<16x48xf32>
    %17 = arith.addf %13, %16 : vector<16x48xf32>
    %cst_18 = arith.constant 0.000000e+00 : f32
    %18 = vector.broadcast %cst_18 : f32 to vector<16x48xf32>
    %19 = arith.maximumf %17, %18 : vector<16x48xf32>
    %c1 = arith.constant 1 : index
    %c0_19 = arith.constant 0 : index
    %c0_20 = arith.constant 0 : index
    %20 = vector.load %arg6[%c1, %c0_19, %c0_20] : memref<2x16x16xf32, #tpu.memory_space<vmem>>, vector<1x16x16xf32>
    %21 = vector.shape_cast %20 : vector<1x16x16xf32> to vector<16x16xf32>
    %cst_21 = arith.constant dense<0.000000e+00> : vector<16x48xf32>
    %22 = tpu.matmul %21, %10, %cst_21 {dimension_numbers = #tpu.dot_dimension_numbers<[1], [0], [0], [1], [0, 0, 1, 1], [], []>} : vector<16x16xf32>, vector<16x48xf32>, vector<16x48xf32> -> vector<16x48xf32>
    %c1_22 = arith.constant 1 : index
    %c0_23 = arith.constant 0 : index
    %c0_24 = arith.constant 0 : index
    %23 = vector.load %arg7[%c1_22, %c0_23, %c0_24] : memref<2x16x1xf32, #tpu.memory_space<vmem>>, vector<1x16x1xf32>
    %24 = vector.shape_cast %23 : vector<1x16x1xf32> to vector<16x1xf32>
    %25 = vector.broadcast %24 : vector<16x1xf32> to vector<16x48xf32>
    %26 = arith.addf %22, %25 : vector<16x48xf32>
    %cst_25 = arith.constant 0.000000e+00 : f32
    %27 = vector.broadcast %cst_25 : f32 to vector<16x48xf32>
    %28 = arith.maximumf %26, %27 : vector<16x48xf32>
    %29 = arith.maximumf %19, %28 : vector<16x48xf32>
    %c0_26 = arith.constant 0 : index
    %c0_27 = arith.constant 0 : index
    %30 = vector.load %arg9[%c0_26, %c0_27] : memref<16x48xf32, #tpu.memory_space<vmem>>, vector<16x48xf32>
    %31 = arith.addf %29, %30 : vector<16x48xf32>
    %c0_28 = arith.constant 0 : index
    %c0_29 = arith.constant 0 : index
    %32 = vector.load %arg8[%c0_28, %c0_29] : memref<48x32xf32, #tpu.memory_space<vmem>>, vector<48x32xf32>
    %cst_30 = arith.constant dense<0.000000e+00> : vector<16x32xf32>
    %33 = tpu.matmul %31, %32, %cst_30 {dimension_numbers = #tpu.dot_dimension_numbers<[1], [0], [0], [1], [0, 0, 1, 1], [], []>} : vector<16x48xf32>, vector<48x32xf32>, vector<16x32xf32> -> vector<16x32xf32>
    %c0_31 = arith.constant 0 : index
    %c0_32 = arith.constant 0 : index
    %c0_33 = arith.constant 0 : index
    %34 = vector.load %arg10[%c0_31, %c0_32, %c0_33] : memref<2x16x16xf32, #tpu.memory_space<vmem>>, vector<1x16x16xf32>
    %35 = vector.shape_cast %34 : vector<1x16x16xf32> to vector<16x16xf32>
    %cst_34 = arith.constant dense<0.000000e+00> : vector<16x32xf32>
    %36 = tpu.matmul %35, %33, %cst_34 {dimension_numbers = #tpu.dot_dimension_numbers<[1], [0], [0], [1], [0, 0, 1, 1], [], []>} : vector<16x16xf32>, vector<16x32xf32>, vector<16x32xf32> -> vector<16x32xf32>
    %c0_35 = arith.constant 0 : index
    %c0_36 = arith.constant 0 : index
    %c0_37 = arith.constant 0 : index
    %37 = vector.load %arg11[%c0_35, %c0_36, %c0_37] : memref<2x16x1xf32, #tpu.memory_space<vmem>>, vector<1x16x1xf32>
    %38 = vector.shape_cast %37 : vector<1x16x1xf32> to vector<16x1xf32>
    %39 = vector.broadcast %38 : vector<16x1xf32> to vector<16x32xf32>
    %40 = arith.addf %36, %39 : vector<16x32xf32>
    %cst_38 = arith.constant 0.000000e+00 : f32
    %41 = vector.broadcast %cst_38 : f32 to vector<16x32xf32>
    %42 = arith.maximumf %40, %41 : vector<16x32xf32>
    %c1_39 = arith.constant 1 : index
    %c0_40 = arith.constant 0 : index
    %c0_41 = arith.constant 0 : index
    %43 = vector.load %arg10[%c1_39, %c0_40, %c0_41] : memref<2x16x16xf32, #tpu.memory_space<vmem>>, vector<1x16x16xf32>
    %44 = vector.shape_cast %43 : vector<1x16x16xf32> to vector<16x16xf32>
    %cst_42 = arith.constant dense<0.000000e+00> : vector<16x32xf32>
    %45 = tpu.matmul %44, %33, %cst_42 {dimension_numbers = #tpu.dot_dimension_numbers<[1], [0], [0], [1], [0, 0, 1, 1], [], []>} : vector<16x16xf32>, vector<16x32xf32>, vector<16x32xf32> -> vector<16x32xf32>
    %c1_43 = arith.constant 1 : index
    %c0_44 = arith.constant 0 : index
    %c0_45 = arith.constant 0 : index
    %46 = vector.load %arg11[%c1_43, %c0_44, %c0_45] : memref<2x16x1xf32, #tpu.memory_space<vmem>>, vector<1x16x1xf32>
    %47 = vector.shape_cast %46 : vector<1x16x1xf32> to vector<16x1xf32>
    %48 = vector.broadcast %47 : vector<16x1xf32> to vector<16x32xf32>
    %49 = arith.addf %45, %48 : vector<16x32xf32>
    %cst_46 = arith.constant 0.000000e+00 : f32
    %50 = vector.broadcast %cst_46 : f32 to vector<16x32xf32>
    %51 = arith.maximumf %49, %50 : vector<16x32xf32>
    %52 = arith.maximumf %42, %51 : vector<16x32xf32>
    %cst_47 = arith.constant 0.000000e+00 : f32
    %53 = vector.broadcast %cst_47 : f32 to vector<4x8xf32>
    %c0_48 = arith.constant 0 : index
    %c0_49 = arith.constant 0 : index
    %c0_50 = arith.constant 0 : index
    %54 = vector.load %arg12[%c0_48, %c0_49, %c0_50] : memref<4x4x16xf32, #tpu.memory_space<vmem>>, vector<1x4x16xf32>
    %55 = vector.shape_cast %54 : vector<1x4x16xf32> to vector<4x16xf32>
    %56 = vector.extract_strided_slice %52 {offsets = [0, 0], sizes = [16, 8], strides = [1, 1]} : vector<16x32xf32> to vector<16x8xf32>
    %cst_51 = arith.constant dense<0.000000e+00> : vector<4x8xf32>
    %57 = tpu.matmul %55, %56, %cst_51 {dimension_numbers = #tpu.dot_dimension_numbers<[1], [0], [0], [1], [0, 0, 1, 1], [], []>} : vector<4x16xf32>, vector<16x8xf32>, vector<4x8xf32> -> vector<4x8xf32>
    %58 = arith.addf %53, %57 : vector<4x8xf32>
    %c1_52 = arith.constant 1 : index
    %c0_53 = arith.constant 0 : index
    %c0_54 = arith.constant 0 : index
    %59 = vector.load %arg12[%c1_52, %c0_53, %c0_54] : memref<4x4x16xf32, #tpu.memory_space<vmem>>, vector<1x4x16xf32>
    %60 = vector.shape_cast %59 : vector<1x4x16xf32> to vector<4x16xf32>
    %61 = vector.extract_strided_slice %52 {offsets = [0, 8], sizes = [16, 8], strides = [1, 1]} : vector<16x32xf32> to vector<16x8xf32>
    %cst_55 = arith.constant dense<0.000000e+00> : vector<4x8xf32>
    %62 = tpu.matmul %60, %61, %cst_55 {dimension_numbers = #tpu.dot_dimension_numbers<[1], [0], [0], [1], [0, 0, 1, 1], [], []>} : vector<4x16xf32>, vector<16x8xf32>, vector<4x8xf32> -> vector<4x8xf32>
    %63 = arith.addf %58, %62 : vector<4x8xf32>
    %c2 = arith.constant 2 : index
    %c0_56 = arith.constant 0 : index
    %c0_57 = arith.constant 0 : index
    %64 = vector.load %arg12[%c2, %c0_56, %c0_57] : memref<4x4x16xf32, #tpu.memory_space<vmem>>, vector<1x4x16xf32>
    %65 = vector.shape_cast %64 : vector<1x4x16xf32> to vector<4x16xf32>
    %66 = vector.extract_strided_slice %52 {offsets = [0, 16], sizes = [16, 8], strides = [1, 1]} : vector<16x32xf32> to vector<16x8xf32>
    %cst_58 = arith.constant dense<0.000000e+00> : vector<4x8xf32>
    %67 = tpu.matmul %65, %66, %cst_58 {dimension_numbers = #tpu.dot_dimension_numbers<[1], [0], [0], [1], [0, 0, 1, 1], [], []>} : vector<4x16xf32>, vector<16x8xf32>, vector<4x8xf32> -> vector<4x8xf32>
    %68 = arith.addf %63, %67 : vector<4x8xf32>
    %c3 = arith.constant 3 : index
    %c0_59 = arith.constant 0 : index
    %c0_60 = arith.constant 0 : index
    %69 = vector.load %arg12[%c3, %c0_59, %c0_60] : memref<4x4x16xf32, #tpu.memory_space<vmem>>, vector<1x4x16xf32>
    %70 = vector.shape_cast %69 : vector<1x4x16xf32> to vector<4x16xf32>
    %71 = vector.extract_strided_slice %52 {offsets = [0, 24], sizes = [16, 8], strides = [1, 1]} : vector<16x32xf32> to vector<16x8xf32>
    %cst_61 = arith.constant dense<0.000000e+00> : vector<4x8xf32>
    %72 = tpu.matmul %70, %71, %cst_61 {dimension_numbers = #tpu.dot_dimension_numbers<[1], [0], [0], [1], [0, 0, 1, 1], [], []>} : vector<4x16xf32>, vector<16x8xf32>, vector<4x8xf32> -> vector<4x8xf32>
    %73 = arith.addf %68, %72 : vector<4x8xf32>
    %c0_62 = arith.constant 0 : index
    %c0_63 = arith.constant 0 : index
    %74 = vector.load %arg13[%c0_62, %c0_63] : memref<4x1xf32, #tpu.memory_space<vmem>>, vector<4x1xf32>
    %75 = vector.broadcast %74 : vector<4x1xf32> to vector<4x8xf32>
    %76 = arith.addf %73, %75 : vector<4x8xf32>
    %c0_64 = arith.constant 0 : index
    %c0_65 = arith.constant 0 : index
    %c0_66 = arith.constant 0 : index
    %77 = vector.load %arg14[%c0_64, %c0_65, %c0_66] : memref<1x4x8xf32, #tpu.memory_space<vmem>>, vector<1x4x8xf32>
    %78 = vector.shape_cast %77 : vector<1x4x8xf32> to vector<4x8xf32>
    %79 = vector.shape_cast %76 : vector<4x8xf32> to vector<1x4x8xf32>
    tpu.vector_store %arg14[%c0_64, %c0_65, %c0_66], %79 {strides = array<i32>} : memref<1x4x8xf32, #tpu.memory_space<vmem>>, vector<1x4x8xf32>,
    return
  }
  func.func @transform_0(%arg0: i32) -> (i32, i32, i32) {
    %c0_i32 = arith.constant 0 : i32
    %c0_i32_0 = arith.constant 0 : i32
    %c0_i32_1 = arith.constant 0 : i32
    return %arg0, %c0_i32, %c0_i32_0 : i32, i32, i32
  }
  func.func @transform_1(%arg0: i32) -> (i32, i32) {
    %c0_i32 = arith.constant 0 : i32
    %c0_i32_0 = arith.constant 0 : i32
    %c0_i32_1 = arith.constant 0 : i32
    return %c0_i32, %c0_i32_0 : i32, i32
  }
  func.func @transform_2(%arg0: i32) -> (i32, i32) {
    %c0_i32 = arith.constant 0 : i32
    %c0_i32_0 = arith.constant 0 : i32
    %c0_i32_1 = arith.constant 0 : i32
    return %c0_i32, %c0_i32_0 : i32, i32
  }
  func.func @transform_3(%arg0: i32) -> (i32, i32) {
    %c0_i32 = arith.constant 0 : i32
    %c0_i32_0 = arith.constant 0 : i32
    %c0_i32_1 = arith.constant 0 : i32
    return %c0_i32, %c0_i32_0 : i32, i32
  }
  func.func @transform_4(%arg0: i32) -> (i32, i32) {
    %c0_i32 = arith.constant 0 : i32
    %c0_i32_0 = arith.constant 0 : i32
    %c0_i32_1 = arith.constant 0 : i32
    return %c0_i32, %c0_i32_0 : i32, i32
  }
  func.func @transform_5(%arg0: i32) -> (i32, i32, i32) {
    %c0_i32 = arith.constant 0 : i32
    %c0_i32_0 = arith.constant 0 : i32
    %c0_i32_1 = arith.constant 0 : i32
    %c0_i32_2 = arith.constant 0 : i32
    return %c0_i32, %c0_i32_0, %c0_i32_1 : i32, i32, i32
  }
  func.func @transform_6(%arg0: i32) -> (i32, i32, i32) {
    %c0_i32 = arith.constant 0 : i32
    %c0_i32_0 = arith.constant 0 : i32
    %c0_i32_1 = arith.constant 0 : i32
    %c0_i32_2 = arith.constant 0 : i32
    return %c0_i32, %c0_i32_0, %c0_i32_1 : i32, i32, i32
  }
  func.func @transform_7(%arg0: i32) -> (i32, i32) {
    %c0_i32 = arith.constant 0 : i32
    %c0_i32_0 = arith.constant 0 : i32
    %c0_i32_1 = arith.constant 0 : i32
    return %c0_i32, %c0_i32_0 : i32, i32
  }
  func.func @transform_8(%arg0: i32) -> (i32, i32) {
    %c0_i32 = arith.constant 0 : i32
    %c0_i32_0 = arith.constant 0 : i32
    %c0_i32_1 = arith.constant 0 : i32
    return %c0_i32, %c0_i32_0 : i32, i32
  }
  func.func @transform_9(%arg0: i32) -> (i32, i32, i32) {
    %c0_i32 = arith.constant 0 : i32
    %c0_i32_0 = arith.constant 0 : i32
    %c0_i32_1 = arith.constant 0 : i32
    %c0_i32_2 = arith.constant 0 : i32
    return %c0_i32, %c0_i32_0, %c0_i32_1 : i32, i32, i32
  }
  func.func @transform_10(%arg0: i32) -> (i32, i32, i32) {
    %c0_i32 = arith.constant 0 : i32
    %c0_i32_0 = arith.constant 0 : i32
    %c0_i32_1 = arith.constant 0 : i32
    %c0_i32_2 = arith.constant 0 : i32
    return %c0_i32, %c0_i32_0, %c0_i32_1 : i32, i32, i32
  }
  func.func @transform_11(%arg0: i32) -> (i32, i32, i32) {
    %c0_i32 = arith.constant 0 : i32
    %c0_i32_0 = arith.constant 0 : i32
    %c0_i32_1 = arith.constant 0 : i32
    %c0_i32_2 = arith.constant 0 : i32
    return %c0_i32, %c0_i32_0, %c0_i32_1 : i32, i32, i32
  }
  func.func @transform_12(%arg0: i32) -> (i32, i32) {
    %c0_i32 = arith.constant 0 : i32
    %c0_i32_0 = arith.constant 0 : i32
    %c0_i32_1 = arith.constant 0 : i32
    return %c0_i32, %c0_i32_0 : i32, i32
  }
  func.func @transform_13(%arg0: i32) -> (i32, i32, i32) {
    %c0_i32 = arith.constant 0 : i32
    %c0_i32_0 = arith.constant 0 : i32
    %c0_i32_1 = arith.constant 0 : i32
    return %arg0, %c0_i32, %c0_i32_0 : i32, i32, i32
  }
}

</mosaic_0001>

<bundles_post_ra>
// kernel: stsgcn_forward.1
= control target key start
LH: loop header
LB: loop body
LE: loop exit
PB: predicated region body
PF: predicated region fallthrough
CT: control target
= control target key end

     0   :  { %18 = vsyncpa [#allocation3], 0  ;;  %s2215_s0 = inlined_call_operand.vmem [shape: f32[2,2,64], index: 0, kind: input, shape index: {}]   ;;  %s2216_s1 = inlined_call_operand.vmem [shape: f32[16,2], index: 1, kind: input, shape index: {}]   ;;  %s2217_s2 = inlined_call_operand.vmem [shape: f32[16,1], index: 2, kind: input, shape index: {}]   ;;  %s2218_s3 = inlined_call_operand.vmem [shape: f32[64,48], index: 3, kind: input, shape index: {}]   ;;  %s2219_s4 = inlined_call_operand.vmem [shape: f32[16,64], index: 4, kind: input, shape index: {}]   ;;  %s2220_s5 = inlined_call_operand.vmem [shape: f32[2,16,16], index: 5, kind: input, shape index: {}]   ;;  %s2221_s6 = inlined_call_operand.vmem [shape: f32[2,16,1], index: 6, kind: input, shape index: {}]   ;;  %s2222_s7 = inlined_call_operand.vmem [shape: f32[48,32], index: 7, kind: input, shape index: {}]   ;;  %s2223_s8 = inlined_call_operand.vmem [shape: f32[16,48], index: 8, kind: input, shape index: {}]   ;;  %s2224_s9 = inlined_call_operand.vmem [shape: f32[2,16,16], index: 9, kind: input, shape index: {}]   ;;  %s2225_s10 = inlined_call_operand.vmem [shape: f32[2,16,1], index: 10, kind: input, shape index: {}]   ;;  %s2226_s11 = inlined_call_operand.vmem [shape: f32[4,4,16], index: 11, kind: input, shape index: {}]   ;;  %s2227_s12 = inlined_call_operand.vmem [shape: f32[4,1], index: 12, kind: input, shape index: {}]   ;;  %s2228_s13 = inlined_call_operand.hbm [shape: f32[2,4,8], index: 13, kind: output, shape index: {}]  }
   0x1   :  { %20 = vsyncpa [#allocation3 + $0x1], 0  ;;  %s1968_s25 = smov 0   ;;  %s1970_s26 = smov 0  }
   0x2   :  { %s1972_s27 = smov 0   ;;  %s1974_s28 = smov 0  }
   0x3 LB: > { %2232 = sst [smem:[#allocation5_spill]] %s1884_s27  ;;  %s1989_s29 = sadd.s32 4294967295, %s1888_s28   ;;  %s1888_s28 = sphi %s1974_s28, %s2237_s28   ;;  %s1884_s27 = sphi %s1972_s27, %s2239_s27   ;;  %s1880_s26 = sphi %s1970_s26, %s2241_s26   ;;  %s1876_s25 = sphi %s1968_s25, %s2240_s25  }
   0x4   : > { %s1523_s30 = sadd.s32 4294967294, %s1888_s28   ;;  %s1993_s14 = sadd.s32 1, %s1888_s28  }
   0x5   : > { %2233 = sst [smem:[#allocation6_spill]] %s1993_s14  ;;  %s311_s15 = sadd.s32 1, %s1884_s27 }
   0x6   : > { %s308_s16 = ssub.s32 %s1888_s28, %s1993_s14  ;;  %p321_p0 = scmp.ne.s32.totalorder %s1884_s27, %s1880_s26 }
   0x7   : > { %p309_p1 = scmp.eq.s32.totalorder %s308_s16, 0  ;;  %p322_p2 = scmp.eq.s32.totalorder %s1989_s29, 1 }
   0x8   : > { %p327_p3 = scmp.ne.s32.totalorder %s1880_s26, %s1876_s25  ;;  %p328_p4 = scmp.eq.s32.totalorder %s1523_s30, 1 }
   0x9   : > { %s2004_s17 = scalar_select %p309_p1, %s1884_s27, %s311_s15  }
   0xa   : > { %p2006_p5 = por %p322_p2, %p321_p0  ;;  %p2010_p6 = por %p328_p4, %p327_p3 }
   0xb   : > { %2234 = sst [smem:[#allocation7_spill]] %s2004_s17  ;;  %p1526_p7 = scmp.ge.s32.totalorder %s1888_s28, 1 }
   0xc   : > { %p389_p8 = scmp.lt.s32.totalorder %s1888_s28, 3 }
   0xe   : > { %p390_p9 = pnand %p1526_p7, %p389_p8 }
   0xf   : > { %p432_p10 = scmp.lt.s32.totalorder (!%p390_p9), %s1989_s29, 1  ;;  %v437_v0 = vld [vmem:[%s2216_s1] sm:$0xff] (!%p390_p9)  ;;  %vm451_vm0 = vcmask (!%p390_p9), 15360   ;;  %v1890_v1 = vmov (!%p390_p9), 0   ;;  %v440_v3 = vld [vmem:[%s2217_s2 + $0x8] sm:$0xff] (!%p390_p9)  ;;  %vm458_vm1 = vcmask (!%p390_p9), 1041408  }
  0x10   : > { %393 = sbr.rel (%p390_p9) target bundleno = 1495 (0x5d7), region = 72  ;;  %1614 = vmatprep.mubr.msk.f32.mxu0 (!%p390_p9), %vm451_vm0, %v437_v0  ;;  %1809 = vset.pattern.permute.xlu0 (!%p390_p9), %v1890_v1  ;;  %v439_v2 = vld [vmem:[%s2217_s2] sm:$0xff] (!%p390_p9)  ;;  %v438_v5 = vld [vmem:[%s2216_s1 + $0x8] sm:$0xff] (!%p390_p9)  ;;  %v543_v11 = vld [vmem:[%s2218_s3 + $0x10] sm:$0xff] (!%p390_p9)  ;;  %vm549_vm2 = vcmask (!%p390_p9), 523264   ;;  %vm645_vm3 = vcmask (!%p390_p9), 130048  }
  0x11   : > { %443 = vperm.xlu0 (!%p390_p9), %1809, %v439_v2   ;;  %1810 = vset.pattern.permute.xlu1 (!%p390_p9), %v1890_v1  ;;  %v634_v6 = vld [vmem:[%s2221_s6 + $0x8] sm:$0xff] (!%p390_p9)  ;;  %v541_v7 = vld [vmem:[%s2218_s3] sm:$0xff] (!%p390_p9)  ;;  %v544_v12 = vld [vmem:[%s2218_s3 + $0x18] sm:$0xff] (!%p390_p9)  ;;  %vm840_vm4 = vcmask (!%p390_p9), 392192   ;;  %vm1892_vm5 = vmmov (!%p390_p9), 0   ;;  %s1895_s30 = smov (!%p390_p9), 120  }
  0x12   : > { %v542_v8 = vld [vmem:[%s2218_s3 + $0x8] sm:$0xff] (!%p390_p9)  ;;  %v924_v10 = vld [vmem:[%s2225_s10] sm:$0xff] (!%p390_p9)  ;;  %v1711_v13 = vpack.c.bf16 (!%p390_p9), %v544_v12, %v543_v11  ;;  %v1548_v14 = vld [vmem:[%s2225_s10 + $0x10] sm:$0xff] (!%p390_p9)  ;;  %s429_s15 = sand.u32 (!%p390_p9), 1, %s1880_s26   ;;  %s1560_s27 = sshll.u32 (!%p390_p9), %s1989_s29, 6  ;;  %vm1448_vm6 = vcmask (!%p390_p9), 60416  }
  0x13   : > { %v1707_v9 = vpack.c.bf16 (!%p390_p9), %v542_v8, %v541_v7  ;;  %v545_v15 = vld [vmem:[%s2218_s3 + $0x20] sm:$0xff] (!%p390_p9)  ;;  %v546_v16 = vld [vmem:[%s2218_s3 + $0x28] sm:$0xff] (!%p390_p9)  ;;  %v547_v18 = vld [vmem:[%s2218_s3 + $0x30] sm:$0xff] (!%p390_p9)  ;;  %s2173_s22 = scalar_lea.hbm (!%p390_p9), %s2228_s13, %s1560_s27  ;;  %s1451_s23 = scalar_lea.sflag (!%p390_p9), [#allocation3], %s429_s15 }
  0x14   : > { %v1715_v17 = vpack.c.bf16 (!%p390_p9), %v546_v16, %v545_v15  ;;  %v548_v19 = vld [vmem:[%s2218_s3 + $0x38] sm:$0xff] (!%p390_p9)  ;;  %v537_v26 = vld [vmem:[%s2219_s4] sm:$0xff] (!%p390_p9)  ;;  %v538_v27 = vld [vmem:[%s2219_s4 + $0x8] sm:$0xff] (!%p390_p9) }
  0x15   : > { %448 = vperm.xlu0 (!%p390_p9), %1809, %v440_v3   ;;  %1708 = vmatprep.subr.bf16.mxu1 (!%p390_p9), %v1707_v9  ;;  %v1719_v20 = vpack.c.bf16 (!%p390_p9), %v548_v19, %v547_v18  ;;  %v631_v31 = vld [vmem:[%s2220_s5] sm:$0xff] (!%p390_p9)  ;;  %v1538_v33 = vld [vmem:[%s2221_s6 + $0x10] sm:$0xff] (!%p390_p9)  ;;  %v1539_v34 = vld [vmem:[%s2221_s6 + $0x18] sm:$0xff] (!%p390_p9) }
  0x16   : > { %1710 = vmatpush3.bf16.msra.mxu1 (!%p390_p9), %v1707_v9  ;;  %v633_v32 = vld [vmem:[%s2221_s6] sm:$0xff] (!%p390_p9)  ;;  %v925_v35 = vld [vmem:[%s2225_s10 + $0x8] sm:$0xff] (!%p390_p9)  ;;  %v1549_v36 = vld [vmem:[%s2225_s10 + $0x18] sm:$0xff] (!%p390_p9) }
  0x17   : > { %s433_s24 = scalar_select %p432_p10, %s1989_s29, 1  ;;  %1712 = vmatprep.subr.bf16.mxu1 %v1711_v13  ;;  %637 = vperm.xlu1 %1810, %v633_v32   ;;  %v632_v40 = vld [vmem:[%s2220_s5 + $0x8] sm:$0xff]  ;;  %v1536_v41 = vld [vmem:[%s2220_s5 + $0x10] sm:$0xff]  ;;  %v1537_v42 = vld [vmem:[%s2220_s5 + $0x18] sm:$0xff] }
  0x18   : > { %v834_v43 = vld [vmem:[%s2222_s7] sm:$0xff]  ;;  %v835_v44 = vld [vmem:[%s2222_s7 + $0x8] sm:$0xff]  ;;  %v836_v46 = vld [vmem:[%s2222_s7 + $0x10] sm:$0xff]  ;;  %s1897_s29 = smov [#allocation2]  }
  0x19   : > { %s1528_s16 = sshll.u32 %s433_s24, 1  ;;  %642 = vperm.xlu0 %1809, %v634_v6   ;;  %v1731_v45 = vpack.c.bf16 %v835_v44, %v834_v43  ;;  %v837_v47 = vld [vmem:[%s2222_s7 + $0x18] sm:$0xff]  ;;  %v838_v49 = vld [vmem:[%s2222_s7 + $0x20] sm:$0xff]  ;;  %v839_v50 = vld [vmem:[%s2222_s7 + $0x28] sm:$0xff]  ;;  %s1894_s24 = smov 112  }
  0x1a   : > { %s435_s17 = scalar_lea.vmem %s2215_s0, %s1528_s16  ;;  %1714 = vmatpush3.bf16.msra.mxu1 %v1711_v13  ;;  %v1735_v48 = vpack.c.bf16 %v837_v47, %v836_v46  ;;  %v1739_v51 = vpack.c.bf16 %v839_v50, %v838_v49  ;;  %v831_v6 = vld [vmem:[%s2223_s8 + $0x8] sm:$0xff]  ;;  %v1546_v15 = vld [vmem:[%s2224_s9 + $0x10] sm:$0xff]  ;;  %v1547_v16 = vld [vmem:[%s2224_s9 + $0x18] sm:$0xff]  ;;  %s1527_s16 = sshll.u32 %s429_s15, 2 }
  0x1b   : > { %v436_v4 = vld [vmem:[%s435_s17] sm:$0x3]  ;;  %1716 = vmatprep.subr.bf16.mxu1 %v1715_v17  ;;  %737 = vperm.xlu1 %1810, %v1538_v33   ;;  %s1896_s17 = smov 104   ;;  %s431_s14 = scalar_lea.vmem [#allocation2], %s1527_s16 }
  0x1c   : > { %1612 = vmatprep.subr.msk.mxu0 %vm458_vm1, %v436_v4 }
  0x1d   : > { %1613 = vmatpush3.msk.msra.mxu0 %vm458_vm1, %v436_v4  ;;  %928 = vperm.xlu0 %1809, %v924_v10   ;;  %v922_v10 = vld [vmem:[%s2224_s9] sm:$0xff] }
  0x1e   : > { %1615 = vmatmul.mubr.msk.f32.vlgmr.msra.gmra.mrb[0].mxu0 %vm451_vm0, %v438_v5  ;;  %1718 = vmatpush3.bf16.msra.mxu1 %v1715_v17  ;;  %v830_v5 = vld [vmem:[%s2223_s8] sm:$0xff]  ;;  %v1891_v17 = vmov 0.0|0.0  }
  0x1f   : > { %1720 = vmatprep.subr.bf16.mxu1 %v1719_v20  ;;  %1640 = vmatprep.mubr.msk.f32.mxu0 %vm645_vm3, %v631_v31 }
  0x20   : > { %742 = vperm.xlu1 %1810, %v1539_v34   ;;  %v1893_v34 = vmov 0.0  }
  0x21   : > { %1027 = vperm.xlu0 %1809, %v1548_v14   ;;  %v923_v14 = vld [vmem:[%s2224_s9 + $0x8] sm:$0xff] }
  0x22   : > { %1722 = vmatpush3.bf16.msra.mxu1 %v1719_v20 }
  0x24   : > { %933 = vperm.xlu1 %1810, %v925_v35  }
  0x28   : > { %1032 = vperm.xlu1 %1810, %v1549_v36  }
  0x90   : > { %v444_v21 = vpop.permute.xlu0 %443 }
  0x94   : > { %v449_v22 = vpop.permute.xlu0 %448 }
  0x96   : > { %v638_v52 = vpop.permute.xlu1 %637 }
  0x98   : > { %v643_v56 = vpop.permute.xlu0 %642 }
  0x9a   : > { %v738_v53 = vpop.permute.xlu1 %737 }
  0x9c   : > { %v929_v19 = vpop.permute.xlu0 %928 }
  0x9f   : > { %v743_v58 = vpop.permute.xlu1 %742 }
  0xa3   : > { %v934_v18 = vpop.permute.xlu1 %933 }
  0xf1   : > { %v1616_v23 = vpop.f32.mrb[0].mxu0 }
  0xf2   : > { %v534_v24 = vadd.f32 %v1616_v23, %v449_v22  ;;  %v528_v25 = vpop.f32.mrb[1].mxu0  ;;  %v1033_v23 = vpop.permute.xlu1 %1032 }
  0xf3   : > { %v529_v28 = vadd.f32 %v528_v25, %v444_v21 }
  0xf4   : > { %v540_v30 = vadd.f32 %v538_v27, %v534_v24 }
  0xf5   : > { %v539_v29 = vadd.f32 %v537_v26, %v529_v28  ;;  %v1028_v26 = vpop.permute.xlu0 %1027 }
  0xf7   : > { %1633 = vmatprep.mubr.msk.f32.mxu1 %vm549_vm2, %v539_v29 }
  0xf8   : > { %1634 = vmatmul.mubr.msk.f32.vlgmr.msra.gmra.mrb[0].mxu1 %vm549_vm2, %v540_v30 }
  0xf9   : > { %1669 = vmatprep.mubr.msk.f32.mxu1 %vm645_vm3, %v922_v10 }
 0x1cb   : > { %v1635_v37 = vpop.f32.mrb[0].mxu1 }
 0x1cc   : > { %v622_v38 = vpop.f32.mrb[1].mxu1 }
 0x1cd   : > { %v1723_v39 = vpack.c.bf16 %v1635_v37, %v622_v38 }
 0x1cf   : > { %1724 = vmatprep.subr.bf16.mxu0 %v1723_v39 }
 0x1d0   : > { %1726 = vmatpush3.bf16.msra.mxu0 %v1723_v39 }
 0x1d1   : > { %1728 = vmatprep.subr.bf16.mxu0 %v1723_v39 }
 0x1d3   : > { %1641 = vmatmul.mubr.msk.f32.vlgmr.msra.gmra.mrb[2].mxu0 %vm645_vm3, %v632_v40  ;;  %v1120_v40 = vld [vmem:[%s2226_s11] sm:$0xf] }
 0x1d4   : > { %1730 = vmatpush3.bf16.msra.mxu0 %v1723_v39  ;;  %1647 = vmatprep.mubr.msk.f32.mxu0 %vm645_vm3, %v1536_v41  ;;  %v1441_v39 = vld [vmem:[%s2227_s12] sm:$0xf] }
 0x1d5   : > { %1732 = vmatprep.subr.bf16.mxu0 %v1731_v45 }
 0x1d7   : > { %1648 = vmatmul.mubr.msk.f32.vlgmr.msra.gmra.mrb[4].mxu0 %vm645_vm3, %v1537_v42 }
 0x1d8   : > { %1734 = vmatpush3.bf16.msra.mxu0 %v1731_v45 }
 0x1d9   : > { %1736 = vmatprep.subr.bf16.mxu0 %v1735_v48 }
 0x1dc   : > { %1738 = vmatpush3.bf16.msra.mxu0 %v1735_v48 }
 0x1dd   : > { %1740 = vmatprep.subr.bf16.mxu0 %v1739_v51 }
 0x1e0   : > { %1742 = vmatpush3.bf16.msra.mxu0 %v1739_v51  ;;  %v1552_v51 = vld [vmem:[%s2226_s11 + $0x4] sm:$0xf] }
 0x1e1   : > { %1751 = vmatprep.subr.bf16.mxu0 %v1891_v17 }
 0x2a6   : > { %v1642_v54 = vpop.f32.mrb[2].mxu0 }
 0x2a7   : > { %v718_v55 = vpop.f32.mrb[3].mxu0  ;;  %v724_v57 = vadd.f32 %v1642_v54, %v643_v56  ;;  %v1555_v54 = vld [vmem:[%s2226_s11 + $0x8] sm:$0xf] }
 0x2a8   : > { %v719_v59 = vadd.f32 %v718_v55, %v638_v52  ;;  %v1557_v55 = vld [vmem:[%s2226_s11 + $0xc] sm:$0xf] }
 0x2a9   : > { %v728_v0 = vmax.f32 %v724_v57, 0.0 }
 0x2aa   : > { %v1649_v60 = vpop.f32.mrb[4].mxu0  ;;  %v727_v2 = vmax.f32 %v719_v59, 0.0 }
 0x2ab   : > { %v823_v61 = vadd.f32 %v1649_v60, %v743_v58  ;;  %v817_v62 = vpop.f32.mrb[5].mxu0 }
 0x2ac   : > { %v818_v63 = vadd.f32 %v817_v62, %v738_v53 }
 0x2ad   : > { %v827_v1 = vmax.f32 %v823_v61, 0.0 }
 0x2ae   : > { %v826_v3 = vmax.f32 %v818_v63, 0.0 }
 0x2af   : > { %v829_v4 = vmax.f32 %v728_v0, %v827_v1 }
 0x2b0   : > { %v828_v7 = vmax.f32 %v727_v2, %v826_v3 }
 0x2b1   : > { %v833_v9 = vadd.f32 %v831_v6, %v829_v4 }
 0x2b2   : > { %v832_v8 = vadd.f32 %v830_v5, %v828_v7 }
 0x2b4   : > { %1662 = vmatprep.mubr.msk.f32.mxu0 %vm840_vm4, %v832_v8 }
 0x2b5   : > { %1663 = vmatmul.mubr.msk.f32.vlgmr.msra.gmra.mrb[6].mxu0 %vm840_vm4, %v833_v9 }
 0x2b6   : > { %1683 = vmatprep.mubr.msk.f32.mxu0 %vm1892_vm5, %v1893_v34 }
 0x388   : > { %v1664_v11 = vpop.f32.mrb[6].mxu0 }
 0x389   : > { %v913_v12 = vpop.f32.mrb[7].mxu0 }
 0x38a   : > { %v1743_v13 = vpack.c.bf16 %v1664_v11, %v913_v12 }
 0x38c   : > { %1744 = vmatprep.subr.bf16.mxu1 %v1743_v13 }
 0x38d   : > { %1746 = vmatpush3.bf16.msra.mxu1 %v1743_v13 }
 0x38e   : > { %1748 = vmatprep.subr.bf16.mxu1 %v1743_v13 }
 0x390   : > { %1670 = vmatmul.mubr.msk.f32.vlgmr.msra.gmra.mrb[2].mxu1 %vm645_vm3, %v923_v14 }
 0x391   : > { %1750 = vmatpush3.bf16.msra.mxu1 %v1743_v13  ;;  %1676 = vmatprep.mubr.msk.f32.mxu1 %vm645_vm3, %v1546_v15 }
 0x392   : > { %1754 = vmatprep.subr.bf16.mxu1 %v1891_v17 }
 0x394   : > { %1677 = vmatmul.mubr.msk.f32.vlgmr.msra.gmra.mrb[4].mxu1 %vm645_vm3, %v1547_v16 }
 0x395   : > { %1690 = vmatprep.mubr.msk.f32.mxu1 %vm1892_vm5, %v1893_v34 }
 0x463   : > { %v1671_v20 = vpop.f32.mrb[2].mxu1 }
 0x464   : > { %v1008_v21 = vpop.f32.mrb[3].mxu1  ;;  %v1014_v22 = vadd.f32 %v1671_v20, %v934_v18 }
 0x465   : > { %v1009_v24 = vadd.f32 %v1008_v21, %v929_v19 }
 0x466   : > { %v1018_v30 = vmax.f32 %v1014_v22, 0.0 }
 0x467   : > { %v1678_v25 = vpop.f32.mrb[4].mxu1  ;;  %v1017_v32 = vmax.f32 %v1009_v24, 0.0 }
 0x468   : > { %v1113_v27 = vadd.f32 %v1678_v25, %v1033_v23  ;;  %v1107_v28 = vpop.f32.mrb[5].mxu1 }
 0x469   : > { %v1108_v29 = vadd.f32 %v1107_v28, %v1028_v26 }
 0x46a   : > { %v1117_v31 = vmax.f32 %v1113_v27, 0.0 }
 0x46b   : > { %v1116_v33 = vmax.f32 %v1108_v29, 0.0 }
 0x46c   : > { %v1119_v35 = vmax.f32 %v1018_v30, %v1117_v31 }
 0x46d   : > { %v1118_v36 = vmax.f32 %v1017_v32, %v1116_v33 }
 0x46f   : > { %v1816_v37 = vpack.i.bf16 %v1119_v35, %v1118_v36  ;;  %v1755_v38 = vpack.c.bf16 %v1119_v35, %v1118_v36 }
 0x471   : > { %1817 = vrot.lane.b32.xlu1 %v1816_v37, %s1894_s24  ;;  %1812 = vrot.lane.b32.xlu0 %v1816_v37, %s1895_s30  ;;  %s1830_s30 = sshll.u32 %s1897_s29, 4  ;;  %s1831_s30 = int_to_ptr.vmem [resolvable:$false] %s1830_s30 }
 0x472   : > { %1756 = vmatpush3.bf16.msra.mxu1 %v1755_v38  ;;  %s1832_s16 = scalar_lea.vmem %s1831_s30, 128 }
 0x473   : > { %1760 = vmatprep.subr.bf16.mxu1 %v1891_v17 }
 0x475   : > { %1444 = vperm.xlu1 %1810, %v1441_v39   ;;  %1822 = vrot.lane.b32.xlu0 %v1816_v37, %s1896_s17  ;;  %s1464_s17 = sshll.u32 %s431_s14, 4  ;;  %s2175_s17 = int_to_ptr.vmem [resolvable:$true] %s1464_s17 }
 0x476   : > { %1691 = vmatmul.mubr.msk.f32.vlgmr.msra.gmra.mrb[6].mxu1 %vm645_vm3, %v1120_v40  ;;  %s1826_s24 = scalar_lea.vmem %s2175_s17, 64  ;;  %p1833_p0 = scmp.lt.s32.totalorder %s2175_s17, %s1831_s30 }
 0x477   : > { %1704 = vmatprep.mubr.msk.f32.mxu1 %vm1892_vm5, %v1893_v34  ;;  %p1827_p11 = scmp.ne.s32.totalorder %s2175_s17, %s1826_s24  ;;  %p1834_p1 = scmp.lt.s32.totalorder %s1832_s16, %s1826_s24 }
 0x479   : > { %p1828_p12 = pnand %p1827_p11, %p2006_p5  ;;  %p1835_p2 = por %p1834_p1, %p1833_p0 }
 0x47b   : > { %p1829_p13 = pneg %p1828_p12 }
 0x47d   : > { %p1836_p3 = pnand %p1835_p2, %p1829_p13 }
 0x4e3   : > { %v1818_v41 = vpop.permute.xlu1 %1817  ;;  %v1813_v42 = vpop.permute.xlu0 %1812 }
 0x4e4   : > { %v1815_v43 = vunpack.i.h.bf16 %v1813_v42  ;;  %v1814_v44 = vunpack.i.l.bf16 %v1813_v42  ;;  %v1820_v45 = vunpack.i.h.bf16 %v1818_v41  ;;  %v1819_v46 = vunpack.i.l.bf16 %v1818_v41 }
 0x4e6   : > { %v1752_v47 = vpack.c.bf16 %v1815_v43, %v1814_v44  ;;  %v1758_v52 = vpack.c.bf16 %v1820_v45, %v1819_v46 }
 0x4e7   : > { %v1823_v48 = vpop.permute.xlu0 %1822 }
 0x4e8   : > { %v1825_v49 = vunpack.i.h.bf16 %v1823_v48  ;;  %v1824_v50 = vunpack.i.l.bf16 %v1823_v48  ;;  %1753 = vmatpush3.bf16.msra.mxu0 %v1752_v47 }
 0x4e9   : > { %1757 = vmatprep.subr.bf16.mxu0 %v1891_v17 }
 0x4ea   : > { %v1761_v53 = vpack.c.bf16 %v1825_v49, %v1824_v50 }
 0x4eb   : > { %1684 = vmatmul.mubr.msk.f32.vlgmr.msra.gmra.mrb[8].mxu0 %vm645_vm3, %v1552_v51 }
 0x4ec   : > { %1759 = vmatpush3.bf16.msra.mxu0 %v1758_v52  ;;  %1762 = vmatpush3.bf16.msra.mxu1 %v1761_v53 }
 0x4ed   : > { %1697 = vmatprep.mubr.msk.f32.mxu0 %vm1892_vm5, %v1893_v34 }
 0x4ef   : > { %1698 = vmatmul.mubr.msk.f32.vlgmr.msra.gmra.mrb[10].mxu0 %vm645_vm3, %v1555_v54  ;;  %1705 = vmatmul.mubr.msk.f32.vlgmr.msra.gmra.mrb[8].mxu1 %vm645_vm3, %v1557_v55 }
 0x4f4   : > { %v1445_v3 = vpop.permute.xlu1 %1444 }
 0x549   : > { %v1273_v56 = vpop.f32.mrb[6].mxu1 }
 0x54a   : > { %v1692_v57 = vpop.f32.mrb[7].mxu1 }
 0x5be   : > { %v1200_v58 = vpop.f32.mrb[8].mxu0 }
 0x5bf   : > { %v1685_v59 = vpop.f32.mrb[9].mxu0  ;;  %v1274_v60 = vadd.f32 %v1273_v56, %v1200_v58 }
 0x5c2   : > { %v1354_v61 = vpop.f32.mrb[10].mxu0  ;;  %v1436_v62 = vpop.f32.mrb[8].mxu1 }
 0x5c3   : > { %v1358_v63 = vadd.f32 %v1354_v61, %v1274_v60  ;;  %v1699_v0 = vpop.f32.mrb[11].mxu0  ;;  %v1706_v1 = vpop.f32.mrb[9].mxu1 }
 0x5c5   : > { %v1440_v2 = vadd.f32 %v1436_v62, %v1358_v63 }
 0x5c7   : > { %v1447_v4 = vadd.f32 %v1445_v3, %v1440_v2 }
 0x5c9   : > { %1449 = vst.msk [vmem:[%s431_s14] sm:$0xf] %vm1448_vm6, %v1447_v4 }
 0x5ca   : > { %1839 = shalt.err (!%p1836_p3)
}
 0x5cb   : > { %s1840_s15 = scalar_lea.hbm %s2173_s22, 64  ;;  %s1844_s20 = scalar_lea.hbm %s2228_s13, 128 }
 0x5cc   : > { %p1841_p4 = scmp.ne.s32.totalorder %s2173_s22, %s1840_s15  ;;  %p1845_p9 = scmp.lt.u32.totalorder %s2173_s22, %s2228_s13 }
 0x5cd   : > { %p1846_p10 = scmp.lt.u32.totalorder %s1844_s20, %s1840_s15  ;;  %p1848_p12 = scmp.lt.u32.totalorder %s1840_s15, %s2173_s22 }
 0x5ce   : > { %p1842_p7 = pnand %p1841_p4, %p2006_p5 }
 0x5cf   : > { %p1847_p11 = por %p1846_p10, %p1845_p9 }
 0x5d0   : > { %p1843_p8 = pneg %p1842_p7 }
 0x5d1   : > { %p1849_p13 = por %p1848_p12, %p1847_p11 }
 0x5d3   : > { %p1850_p0 = pnand %p1849_p13, %p1843_p8 }
 0x5d5   : > { %1853 = shalt.err (!%p1850_p0)
}
 0x5d6   : > { %1763 = dma.vmem_to_hbm [thread:$0]  (%p2006_p5), %s2175_s17, 64, %s2173_s22, %s1451_s23  }
 0x5d7 PF: > { %p1769_p1 = scmp.ge.s32.totalorder %s1888_s28, 2  ;;  %s1476_s24 = sand.u32 1, %s1876_s25  }
 0x5d8   : > { %s1477_s30 = scalar_lea.sflag [#allocation3], %s1476_s24 }
 0x5d9   : > { %p1766_p2 = pnand %p1769_p1, %p2010_p6 }
 0x5db   : > { %1871 = dma.done.wait (!%p1766_p2), %s1477_s30, 64  }
 0x5dc   : > { %1873 = vsyncadd (!%p1766_p2), %s1477_s30, 4294967232  ;;  %s2237_s28 = sld [smem:[#allocation6_spill]]  ;;  %s2238_s16 = sld [smem:[#allocation5_spill]] }
 0x5dd   : > { %s2239_s27 = sld [smem:[#allocation7_spill]]  ;;  %s2240_s25 = smov %s1880_s26 }
 0x5e2   : > { %p23_p3 = scmp.ge.s32.totalorder %s2237_s28, 4   ;;  %s2241_s26 = smov %s2238_s16 }
 0x5e4   :  { %25 = sbr.rel (!%p23_p3) target bundleno = 3 (0x3), region = 114 }
 0x5eb   :  { %1482 = vsyncpa [#allocation3], 1 }
 0x5ec   :  { %1484 = vsyncpa [#allocation3 + $0x1], 1 }

</bundles_post_ra>
